<compile_context>
chip_gen: v6e
topology: v6e:2x2x1
jax: 0.10.0
libtpu: 0.0.40
codegen_flags: <defaults>
</compile_context>

<pallas_src>
import functools
import math

import jax
import jax.numpy as jnp
from jax.experimental import pallas as pl
from jax.experimental.pallas import tpu as pltpu


# --- Cephes-style single-precision sincos constants -------------------------
_TWO_OVER_PI = 0.6366197723675814
# pi/2 split into 3 f32-exact pieces (Cody-Waite); exact products for |n|<2^12,
# far beyond this module's |pos_enc| (tens, since coords in [0,1), proj~N(0,pi*sigma)).
_PIO2_1 = 1.5703125
_PIO2_2 = 4.837512969970703125e-4
_PIO2_3 = 7.549789948768648e-8
# minimax polynomials on [-pi/4, pi/4]
_SIN_C1 = -1.6666654611e-1
_SIN_C2 = 8.3321608736e-3
_SIN_C3 = -1.9515295891e-4
_COS_C1 = 4.166664568298827e-2
_COS_C2 = -1.388731625493765e-3
_COS_C3 = 2.443315711809948e-5


def _fused_sincos_scaled(x, c):
    """Return (c*sin(x), c*cos(x)) sharing one range reduction.

    `c` is a Python float folded into the polynomial coefficients at trace
    time, so the scaling costs zero extra runtime vector ops.
    """
    # Shared range reduction: x = n*(pi/2) + y, |y| ~<= pi/4.
    n = jnp.floor(x * _TWO_OVER_PI + 0.5)
    y = ((x - n * _PIO2_1) - n * _PIO2_2) - n * _PIO2_3
    q = n.astype(jnp.int32) & 3  # quadrant
    y2 = y * y

    # c*sin(y):  (c*y) * (1 + y2*(s1 + y2*(s2 + y2*s3)))
    sin_p = (c * y) * (1.0 + y2 * (_SIN_C1 + y2 * (_SIN_C2 + y2 * _SIN_C3)))
    # c*cos(y): coefficients pre-scaled by c (Python constants, folded at trace time)
    cos_p = (c * 1.0) + y2 * (
        (c * -0.5)
        + y2 * ((c * _COS_C1) + y2 * ((c * _COS_C2) + y2 * (c * _COS_C3)))
    )

    # Quadrant selection:
    #   sin(x): q=0 -> s, 1 -> c, 2 -> -s, 3 -> -c
    #   cos(x): q=0 -> c, 1 -> -s, 2 -> -c, 3 -> s
    swap = (q & 1) == 1
    sin_v = jnp.where(swap, cos_p, sin_p)
    cos_v = jnp.where(swap, sin_p, cos_p)
    sin_v = jnp.where((q & 2) == 2, -sin_v, sin_v)
    cos_v = jnp.where(((q + 1) & 2) == 2, -cos_v, cos_v)
    return sin_v, cos_v


def _rff_kernel(coords_ref, proj_ref, out_ref, *, scale, num_frequencies):
    # coords_ref: (tm, in_features)  proj_ref: (in_features, F)  out_ref: (tm, 2F)
    # K=3 contraction on the MXU (vector-extended slot is otherwise idle here).
    pos_enc = jnp.dot(
        coords_ref[...], proj_ref[...], preferred_element_type=jnp.float32
    )
    # Static fold of the module's `scale / sqrt(F)` into the sincos coefficients.
    c = 1.0 if scale == -1 else float(scale) / math.sqrt(num_frequencies)
    sin_v, cos_v = _fused_sincos_scaled(pos_enc, c)
    # Direct slice stores into the two output halves.  For F % 128 == 0 (e.g.
    # F=256) these are unmasked lane-dense stores; other F stays correct but
    # falls off the fast store path.
    out_ref[:, :num_frequencies] = sin_v.astype(out_ref.dtype)
    out_ref[:, num_frequencies:] = cos_v.astype(out_ref.dtype)


def _round_up(x, m):
    return ((x + m - 1) // m) * m


def rand_fourier_feature(coords, proj, *, sigma=6.05, scale=-1, tm=2048):
    """coords: [N, in_features] f32, proj: [in_features, F] f32 -> [N, 2F] f32."""
    n, in_features = coords.shape
    in_features_p, num_freq = proj.shape
    assert in_features == in_features_p
    out_dim = 2 * num_freq

    # Fold sigma into the persistent projection buffer once (outside the kernel).
    proj_scaled = (proj * jnp.asarray(sigma, jnp.float32)).astype(proj.dtype)

    # Row tile: multiple of 8, capped at 4096 for v7x's 64 MiB VMEM
    # (double-buffered output tile dominates: 2 * tm * 2F * 4 B).
    n_min8 = _round_up(n, 8)
    tm_eff = max(8, min(int(tm), 4096))
    tm_eff = (tm_eff // 8) * 8
    # Megacore: keep at least 2 grid steps whenever the batch allows it so
    # both v7x TensorCores get work under dimension_semantics=("parallel",).
    if n_min8 >= 16:
        tm_eff = min(tm_eff, _round_up((n_min8 + 1) // 2, 8))
    else:
        tm_eff = min(tm_eff, n_min8)

    # Pad N up to a multiple of the tile; padded rows are discarded at the end.
    n_pad = _round_up(n, tm_eff)
    coords_p = coords if n_pad == n else jnp.pad(coords, ((0, n_pad - n), (0, 0)))

    kernel = functools.partial(_rff_kernel, scale=scale, num_frequencies=num_freq)

    out = pl.pallas_call(
        kernel,
        out_shape=jax.ShapeDtypeStruct((n_pad, out_dim), coords.dtype),
        grid_spec=pltpu.PrefetchScalarGridSpec(
            num_scalar_prefetch=0,
            grid=(n_pad // tm_eff,),
            in_specs=[
                # coords tile: (tm, in_features); in_features equals the full
                # array dim so the (8,128) rule does not apply to it.
                pl.BlockSpec((tm_eff, in_features), lambda i: (i, 0)),
                # proj is small and constant across the grid; keep it resident.
                pl.BlockSpec((in_features, num_freq), lambda i: (0, 0)),
            ],
            out_specs=pl.BlockSpec((tm_eff, out_dim), lambda i: (i, 0)),
        ),
        compiler_params=pltpu.CompilerParams(
            dimension_semantics=("parallel",),
            vmem_limit_bytes=32 * 1024 * 1024,
        ),
    )(coords_p, proj_scaled)

    return out[:n] if n_pad != n else out


def reference(coords, proj, *, sigma=6.05, scale=-1):
    pos_enc = coords @ (proj * sigma)
    out = jnp.concatenate([jnp.sin(pos_enc), jnp.cos(pos_enc)], axis=-1)
    if scale != -1:
        out = out * (scale / math.sqrt(proj.shape[1]))
    return out


if __name__ == "__main__":
    in_features = 3
    num_frequencies = 256
    sigma = 6.05

    key = jax.random.PRNGKey(0)
    k_coords, k_proj = jax.random.split(key)

    # Small, deliberately non-multiple-of-8 batch to exercise padding and the
    # >=2-grid-step (megacore) tiling path.
    n = 50
    coords = jax.random.uniform(k_coords, (n, in_features), dtype=jnp.float32)
    # deterministic "buffer" init: randn * pi (matches reset_parameters)
    proj = (
        jax.random.normal(k_proj, (in_features, num_frequencies), dtype=jnp.float32)
        * math.pi
    )

    ok = True
    for scale in (-1, 10.0):  # default (no rescale) and an explicit rescale
        out = rand_fourier_feature(coords, proj, sigma=sigma, scale=scale)
        out = jax.block_until_ready(out)
        ref = reference(coords, proj, sigma=sigma, scale=scale)
        assert out.shape == (n, 2 * num_frequencies), out.shape
        ok = ok and bool(jnp.allclose(out, ref, atol=1e-4, rtol=1e-4))
        assert ok, float(jnp.max(jnp.abs(out - ref)))

    print("KERNEL_OK")
</pallas_src>

<mosaic_0001>
module attributes {stable_mosaic.version = 11 : i64} {
  func.func @_rff_kernel(%arg0: i32, %arg1: memref<32x3xf32, #tpu.memory_space<vmem>>, %arg2: memref<3x256xf32, #tpu.memory_space<vmem>>, %arg3: memref<32x512xf32, #tpu.memory_space<vmem>>) attributes {dimension_semantics = [#tpu.dimension_semantics<parallel>], iteration_bounds = array<i64: 2>, scalar_prefetch = 0 : i64, scratch_operands = 0 : i64, tpu.core_type = #tpu.core_type<tc>, window_params = [{transform_indices = @transform_0, window_bounds = array<i64: 32, 3>}, {pipeline_mode = #tpu.pipeline_mode<synchronous>, transform_indices = @transform_1, window_bounds = array<i64: 3, 256>}, {transform_indices = @transform_2, window_bounds = array<i64: 32, 512>}]} {
    %c0 = arith.constant 0 : index
    %c0_0 = arith.constant 0 : index
    %0 = vector.load %arg1[%c0, %c0_0] : memref<32x3xf32, #tpu.memory_space<vmem>>, vector<32x3xf32>
    %c0_1 = arith.constant 0 : index
    %c0_2 = arith.constant 0 : index
    %1 = vector.load %arg2[%c0_1, %c0_2] : memref<3x256xf32, #tpu.memory_space<vmem>>, vector<3x256xf32>
    %cst = arith.constant dense<0.000000e+00> : vector<32x256xf32>
    %2 = tpu.matmul %0, %1, %cst {dimension_numbers = #tpu.dot_dimension_numbers<[1], [0], [0], [1], [0, 0, 1, 1], [], []>} : vector<32x3xf32>, vector<3x256xf32>, vector<32x256xf32> -> vector<32x256xf32>
    %cst_3 = arith.constant 0.636619746 : f32
    %3 = vector.broadcast %cst_3 : f32 to vector<32x256xf32>
    %4 = arith.mulf %2, %3 : vector<32x256xf32>
    %cst_4 = arith.constant 5.000000e-01 : f32
    %5 = vector.broadcast %cst_4 : f32 to vector<32x256xf32>
    %6 = arith.addf %4, %5 : vector<32x256xf32>
    %7 = math.floor %6 : vector<32x256xf32>
    %cst_5 = arith.constant 1.5703125 : f32
    %8 = vector.broadcast %cst_5 : f32 to vector<32x256xf32>
    %9 = arith.mulf %7, %8 : vector<32x256xf32>
    %10 = arith.subf %2, %9 : vector<32x256xf32>
    %cst_6 = arith.constant 4.83751297E-4 : f32
    %11 = vector.broadcast %cst_6 : f32 to vector<32x256xf32>
    %12 = arith.mulf %7, %11 : vector<32x256xf32>
    %13 = arith.subf %10, %12 : vector<32x256xf32>
    %cst_7 = arith.constant 7.549790e-08 : f32
    %14 = vector.broadcast %cst_7 : f32 to vector<32x256xf32>
    %15 = arith.mulf %7, %14 : vector<32x256xf32>
    %16 = arith.subf %13, %15 : vector<32x256xf32>
    %17 = arith.fptosi %7 : vector<32x256xf32> to vector<32x256xi32>
    %c3_i32 = arith.constant 3 : i32
    %18 = vector.broadcast %c3_i32 : i32 to vector<32x256xi32>
    %19 = arith.andi %17, %18 : vector<32x256xi32>
    %20 = arith.mulf %16, %16 : vector<32x256xf32>
    %cst_8 = arith.constant 1.000000e+00 : f32
    %21 = vector.broadcast %cst_8 : f32 to vector<32x256xf32>
    %22 = arith.mulf %21, %16 : vector<32x256xf32>
    %cst_9 = arith.constant -1.95152956E-4 : f32
    %23 = vector.broadcast %cst_9 : f32 to vector<32x256xf32>
    %24 = arith.mulf %20, %23 : vector<32x256xf32>
    %cst_10 = arith.constant 0.00833216123 : f32
    %25 = vector.broadcast %cst_10 : f32 to vector<32x256xf32>
    %26 = arith.addf %25, %24 : vector<32x256xf32>
    %27 = arith.mulf %20, %26 : vector<32x256xf32>
    %cst_11 = arith.constant -0.166666552 : f32
    %28 = vector.broadcast %cst_11 : f32 to vector<32x256xf32>
    %29 = arith.addf %28, %27 : vector<32x256xf32>
    %30 = arith.mulf %20, %29 : vector<32x256xf32>
    %cst_12 = arith.constant 1.000000e+00 : f32
    %31 = vector.broadcast %cst_12 : f32 to vector<32x256xf32>
    %32 = arith.addf %31, %30 : vector<32x256xf32>
    %33 = arith.mulf %22, %32 : vector<32x256xf32>
    %cst_13 = arith.constant 2.44331568E-5 : f32
    %34 = vector.broadcast %cst_13 : f32 to vector<32x256xf32>
    %35 = arith.mulf %20, %34 : vector<32x256xf32>
    %cst_14 = arith.constant -0.00138873165 : f32
    %36 = vector.broadcast %cst_14 : f32 to vector<32x256xf32>
    %37 = arith.addf %36, %35 : vector<32x256xf32>
    %38 = arith.mulf %20, %37 : vector<32x256xf32>
    %cst_15 = arith.constant 0.0416666456 : f32
    %39 = vector.broadcast %cst_15 : f32 to vector<32x256xf32>
    %40 = arith.addf %39, %38 : vector<32x256xf32>
    %41 = arith.mulf %20, %40 : vector<32x256xf32>
    %cst_16 = arith.constant -5.000000e-01 : f32
    %42 = vector.broadcast %cst_16 : f32 to vector<32x256xf32>
    %43 = arith.addf %42, %41 : vector<32x256xf32>
    %44 = arith.mulf %20, %43 : vector<32x256xf32>
    %cst_17 = arith.constant 1.000000e+00 : f32
    %45 = vector.broadcast %cst_17 : f32 to vector<32x256xf32>
    %46 = arith.addf %45, %44 : vector<32x256xf32>
    %c1_i32 = arith.constant 1 : i32
    %47 = vector.broadcast %c1_i32 : i32 to vector<32x256xi32>
    %48 = arith.andi %19, %47 : vector<32x256xi32>
    %c1_i32_18 = arith.constant 1 : i32
    %49 = vector.broadcast %c1_i32_18 : i32 to vector<32x256xi32>
    %50 = arith.cmpi eq, %48, %49 : vector<32x256xi32>
    %51 = arith.select %50, %46, %33 : vector<32x256xi1>, vector<32x256xf32>
    %52 = arith.select %50, %33, %46 : vector<32x256xi1>, vector<32x256xf32>
    %c2_i32 = arith.constant 2 : i32
    %53 = vector.broadcast %c2_i32 : i32 to vector<32x256xi32>
    %54 = arith.andi %19, %53 : vector<32x256xi32>
    %c2_i32_19 = arith.constant 2 : i32
    %55 = vector.broadcast %c2_i32_19 : i32 to vector<32x256xi32>
    %56 = arith.cmpi eq, %54, %55 : vector<32x256xi32>
    %cst_20 = arith.constant 0.000000e+00 : f32
    %57 = vector.broadcast %cst_20 : f32 to vector<32x256xf32>
    %58 = arith.subf %57, %51 : vector<32x256xf32>
    %59 = arith.select %56, %58, %51 : vector<32x256xi1>, vector<32x256xf32>
    %c1_i32_21 = arith.constant 1 : i32
    %60 = vector.broadcast %c1_i32_21 : i32 to vector<32x256xi32>
    %61 = arith.addi %19, %60 : vector<32x256xi32>
    %c2_i32_22 = arith.constant 2 : i32
    %62 = vector.broadcast %c2_i32_22 : i32 to vector<32x256xi32>
    %63 = arith.andi %61, %62 : vector<32x256xi32>
    %c2_i32_23 = arith.constant 2 : i32
    %64 = vector.broadcast %c2_i32_23 : i32 to vector<32x256xi32>
    %65 = arith.cmpi eq, %63, %64 : vector<32x256xi32>
    %cst_24 = arith.constant 0.000000e+00 : f32
    %66 = vector.broadcast %cst_24 : f32 to vector<32x256xf32>
    %67 = arith.subf %66, %52 : vector<32x256xf32>
    %68 = arith.select %65, %67, %52 : vector<32x256xi1>, vector<32x256xf32>
    %c0_25 = arith.constant 0 : index
    %c0_26 = arith.constant 0 : index
    %69 = vector.load %arg3[%c0_25, %c0_26] : memref<32x512xf32, #tpu.memory_space<vmem>>, vector<32x256xf32>
    tpu.vector_store %arg3[%c0_25, %c0_26], %59 {strides = array<i32>} : memref<32x512xf32, #tpu.memory_space<vmem>>, vector<32x256xf32>,
    %c0_27 = arith.constant 0 : index
    %c256 = arith.constant 256 : index
    %70 = vector.load %arg3[%c0_27, %c256] : memref<32x512xf32, #tpu.memory_space<vmem>>, vector<32x256xf32>
    tpu.vector_store %arg3[%c0_27, %c256], %68 {strides = array<i32>} : memref<32x512xf32, #tpu.memory_space<vmem>>, vector<32x256xf32>,
    return
  }
  func.func @transform_0(%arg0: i32) -> (i32, i32) {
    %c0_i32 = arith.constant 0 : i32
    %c0_i32_0 = arith.constant 0 : i32
    return %arg0, %c0_i32 : i32, i32
  }
  func.func @transform_1(%arg0: i32) -> (i32, i32) {
    %c0_i32 = arith.constant 0 : i32
    %c0_i32_0 = arith.constant 0 : i32
    %c0_i32_1 = arith.constant 0 : i32
    return %c0_i32, %c0_i32_0 : i32, i32
  }
  func.func @transform_2(%arg0: i32) -> (i32, i32) {
    %c0_i32 = arith.constant 0 : i32
    %c0_i32_0 = arith.constant 0 : i32
    return %arg0, %c0_i32 : i32, i32
  }
}

</mosaic_0001>

<bundles_post_ra>
// kernel: tpu_custom_call.1
= control target key start
LH: loop header
LB: loop body
LE: loop exit
PB: predicated region body
PF: predicated region fallthrough
CT: control target
= control target key end

     0   :  { %7 = vsyncpa [#allocation3], 0  ;;  %s1145_s0 = inlined_call_operand.vmem [shape: f32[64,3], index: 0, kind: input, shape index: {}]   ;;  %s1146_s1 = inlined_call_operand.vmem [shape: f32[3,256], index: 1, kind: input, shape index: {}]   ;;  %s1147_s2 = inlined_call_operand.hbm [shape: f32[64,512], index: 2, kind: output, shape index: {}]  }
   0x1   :  { %9 = vsyncpa [#allocation3 + $0x1], 0  ;;  %s835_s9 = smov 0   ;;  %s837_s10 = smov 0  }
   0x2   :  { %s839_s11 = smov 0   ;;  %s841_s12 = smov 0  }
   0x3 LB: > { %s856_s13 = sadd.s32 4294967295, %s814_s12   ;;  %s672_s14 = sadd.s32 4294967294, %s814_s12   ;;  %s814_s12 = sphi %s841_s12, %s1179_s12   ;;  %s810_s11 = sphi %s839_s11, %s1178_s11   ;;  %s806_s10 = sphi %s837_s10, %s1177_s10   ;;  %s802_s9 = sphi %s835_s9, %s1176_s9  }
   0x4   : > { %s860_s15 = sadd.s32 1, %s814_s12   ;;  %s69_s16 = sadd.s32 1, %s810_s11 }
   0x5   : > { %s66_s17 = ssub.s32 %s814_s12, %s860_s15  ;;  %p79_p0 = scmp.ne.s32.totalorder %s810_s11, %s806_s10 }
   0x6   : > { %p67_p1 = scmp.eq.s32.totalorder %s66_s17, 0  ;;  %p80_p2 = scmp.eq.s32.totalorder %s856_s13, 1 }
   0x7   : > { %p85_p3 = scmp.ne.s32.totalorder %s806_s10, %s802_s9  ;;  %p86_p4 = scmp.eq.s32.totalorder %s672_s14, 1 }
   0x8   : > { %s871_s18 = scalar_select %p67_p1, %s810_s11, %s69_s16  }
   0x9   : > { %p873_p5 = por %p80_p2, %p79_p0  ;;  %p877_p6 = por %p86_p4, %p85_p3 }
   0xa   : > { %p675_p7 = scmp.ge.s32.totalorder %s814_s12, 1  ;;  %p116_p8 = scmp.lt.s32.totalorder %s814_s12, 3 }
   0xc   : > { %p117_p9 = pnand %p675_p7, %p116_p8 }
   0xd   : > { %s677_s23 = sshll.u32 (!%p117_p9), %s856_s13, 2  ;;  %s135_s28 = sand.u32 (!%p117_p9), 1, %s806_s10  }
   0xe   : > { %120 = sbr.rel (%p117_p9) target bundleno = 321 (0x141), region = 28  ;;  %p139_p10 = scmp.lt.s32.totalorder (!%p117_p9), %s677_s23, 7 }
   0xf   : > { %s676_s29 = sshll.u32 (!%p117_p9), %s135_s28, 7  ;;  %s692_s3 = sshll.u32 (!%p117_p9), %s856_s13, 11 }
  0x10   : > { %s996_s30 = scalar_lea.vmem (!%p117_p9), [#allocation2], %s676_s29  ;;  %s1095_s7 = scalar_lea.hbm (!%p117_p9), %s1147_s2, %s692_s3 }
  0x11   : > { %s610_s4 = sshll.u32 (!%p117_p9), %s996_s30, 4  ;;  %s1105_s8 = scalar_lea.sflag (!%p117_p9), [#allocation3], %s135_s28  ;;  %s1097_s4 = int_to_ptr.vmem [resolvable:$true] %s610_s4 }
  0x12   : > { %s754_s13 = scalar_lea.vmem (!%p117_p9), %s1097_s4, 2048  ;;  %s817_s14 = smov (!%p117_p9), [#allocation2]  }
  0x13   : > { %v149_v0 = vld [vmem:[%s1146_s1] sm:$0x77]  ;;  %vm165_vm0 = vcmask 1042432   ;;  %v816_v2 = vmov 0.0   ;;  %s1181_s23 = smov (!%p139_p10, %s677_s23), 7  ;;  %vm152_vm1 = vcmask 23552   ;;  %p755_p11 = scmp.ne.s32.totalorder %s1097_s4, %s754_s13 }
  0x14   : > { %v151_v1 = vcombine.high %v149_v0, %v149_v0  ;;  %234 = vmatprep.mubr.f32.mxu0 %v816_v2  ;;  %246 = vmatprep.mubr.f32.mxu1 %v816_v2  ;;  %s678_s24 = sshll.u32 %s1181_s23, 3  ;;  %s758_s16 = sshll.u32 %s817_s14, 4  ;;  %s759_s16 = int_to_ptr.vmem [resolvable:$false] %s758_s16 }
  0x15   : > { %s142_s27 = scalar_lea.vmem %s1145_s0, %s678_s24  ;;  %p756_p12 = pnand %p755_p11, %p873_p5 }
  0x16   : > { %679 = vmatprep.subr.msk.mxu0 %vm165_vm0, %v151_v1  ;;  %693 = vmatprep.subr.msk.mxu1 %vm165_vm0, %v151_v1  ;;  %v145_v3 = vld [vmem:[%s142_s27] sm:$0xff]  ;;  %v147_v4 = vld [vmem:[%s142_s27 + $0x10] sm:$0xff]  ;;  %v146_v5 = vld [vmem:[%s142_s27 + $0x8] sm:$0xff]  ;;  %s760_s17 = scalar_lea.vmem %s759_s16, 4096  ;;  %p761_p0 = scmp.lt.s32.totalorder %s1097_s4, %s759_s16 }
  0x17   : > { %680 = vmatpush1.msk.msra.mxu0 %vm165_vm0, %v149_v0  ;;  %694 = vmatpush1.msk.msra.mxu1 %vm165_vm0, %v149_v0  ;;  %v148_v6 = vld [vmem:[%s142_s27 + $0x18] sm:$0xff]  ;;  %p757_p13 = pneg %p756_p12  ;;  %p762_p1 = scmp.lt.s32.totalorder %s760_s17, %s754_s13 }
  0x18   : > { %681 = vmatmul.mubr.msk.f32.vlgmr.msra.gmra.mxu0 %vm152_vm1, %v145_v3  ;;  %683 = vmatmul.mubr.msk.f32.vlgmr.msra.gmra.mxu1 %vm152_vm1, %v147_v4 }
  0x19   : > { %240 = vmatprep.mubr.f32.mxu0 %v816_v2  ;;  %252 = vmatprep.mubr.f32.mxu1 %v816_v2  ;;  %p763_p2 = por %p762_p1, %p761_p0 }
  0x1b   : > { %p764_p3 = pnand %p763_p2, %p757_p13 }
  0x1c   : > { %682 = vmatmul.mubr.msk.f32.gmra.mxu0 %vm152_vm1, %v146_v5  ;;  %684 = vmatmul.mubr.msk.f32.gmra.mxu1 %vm152_vm1, %v148_v6 }
  0xd8   : > { %v236_v7 = vpop.f32.mrf.mxu0  ;;  %v248_v8 = vpop.f32.mrf.mxu1 }
  0xd9   : > { %v259_v9 = vmul.f32 0.63661975, %v236_v7  ;;  %v263_v10 = vmul.f32 0.63661975, %v248_v8 }
  0xda   : > { %v238_v11 = vpop.f32.mrf.mxu0  ;;  %v890_v15 = vpop.f32.mrf.mxu1 }
  0xdb   : > { %v267_v12 = vadd.f32 0.5, %v259_v9  ;;  %v271_v13 = vadd.f32 0.5, %v263_v10  ;;  %v260_v14 = vmul.f32 0.63661975, %v238_v11  ;;  %v264_v19 = vmul.f32 0.63661975, %v890_v15 }
  0xdc   : > { %v893_v24 = vpop.f32.mrf.mxu0  ;;  %v895_v25 = vpop.f32.mrf.mxu1 }
  0xdd   : > { %v275_v16 = vfloor.f32 %v267_v12  ;;  %v279_v17 = vfloor.f32 %v271_v13  ;;  %v268_v18 = vadd.f32 0.5, %v260_v14  ;;  %v272_v33 = vadd.f32 0.5, %v264_v19 }
  0xde   : > { %v261_v36 = vmul.f32 0.63661975, %v893_v24  ;;  %v265_v37 = vmul.f32 0.63661975, %v895_v25 }
  0xdf   : > { %v283_v20 = vmul.f32 1.5703125, %v275_v16  ;;  %v695_v21 = vtrunc.f32 %v275_v16  ;;  %v287_v22 = vmul.f32 1.5703125, %v279_v17  ;;  %v703_v23 = vtrunc.f32 %v279_v17 }
  0xe0   : > { %v299_v27 = vmul.f32 0.0004837513, %v275_v16  ;;  %v276_v29 = vfloor.f32 %v268_v18  ;;  %v303_v31 = vmul.f32 0.0004837513, %v279_v17  ;;  %v315_v35 = vmul.f32 7.54979e-08, %v275_v16 }
  0xe1   : > { %v291_v26 = vsub.f32 %v236_v7, %v283_v20  ;;  %v696_v28 = vcvt.f32.s32 %v695_v21  ;;  %v295_v30 = vsub.f32 %v248_v8, %v287_v22  ;;  %v704_v32 = vcvt.f32.s32 %v703_v23 }
  0xe2   : > { %v319_v40 = vmul.f32 7.54979e-08, %v279_v17  ;;  %v284_v42 = vmul.f32 1.5703125, %v276_v29  ;;  %v697_v45 = vtrunc.f32 %v276_v29  ;;  %v903_v46 = vfloor.f32 %v272_v33 }
  0xe3   : > { %v307_v34 = vsub.f32 %v291_v26, %v299_v27  ;;  %v339_v38 = vand.u32 3, %v696_v28  ;;  %v311_v39 = vsub.f32 %v295_v30, %v303_v31  ;;  %v343_v44 = vand.u32 3, %v704_v32 }
  0xe4   : > { %v300_v48 = vmul.f32 0.0004837513, %v276_v29  ;;  %v909_v49 = vadd.f32 0.5, %v261_v36  ;;  %v911_v50 = vadd.f32 0.5, %v265_v37  ;;  %v316_v54 = vmul.f32 7.54979e-08, %v276_v29 }
  0xe5   : > { %v899_v41 = vsub.f32 %v307_v34, %v315_v35  ;;  %v901_v43 = vsub.f32 %v311_v39, %v319_v40  ;;  %v475_v51 = vand.u32 1, %v339_v38  ;;  %v507_v52 = vand.u32 2, %v339_v38 }
  0xe6   : > { %v539_v57 = vadd.s32 1, %v339_v38  ;;  %v292_v58 = vsub.f32 %v238_v11, %v284_v42  ;;  %v543_v61 = vadd.s32 1, %v343_v44  ;;  %v698_v62 = vcvt.f32.s32 %v697_v45 }
  0xe7   : > { %v907_v47 = vmul.f32 %v899_v41, %v899_v41  ;;  %v351_v53 = vmul.f32 %v901_v43, %v901_v43  ;;  %v288_v2 = vmul.f32 1.5703125, %v903_v46  ;;  %v479_v5 = vand.u32 1, %v343_v44 }
  0xe8   : > { %v308_v1 = vsub.f32 %v292_v58, %v300_v48  ;;  %v918_v6 = vand.u32 3, %v698_v62  ;;  %v511_v9 = vand.u32 2, %v343_v44  ;;  %v547_v11 = vand.u32 2, %v539_v57 }
  0xe9   : > { %v355_v55 = vmul.f32 -0.00019515296, %v907_v47  ;;  %v411_v56 = vmul.f32 2.4433157e-05, %v907_v47  ;;  %v359_v59 = vmul.f32 -0.00019515296, %v351_v53  ;;  %v296_v14 = vsub.f32 %v890_v15, %v288_v2 }
  0xea   : > { %v415_v60 = vmul.f32 2.4433157e-05, %v351_v53  ;;  %v922_v10 = vsub.f32 %v308_v1, %v316_v54  ;;  %v551_v18 = vand.u32 2, %v543_v61  ;;  %vm929_vm2 = vcmp.eq.s32.totalorder %v475_v51, 1 }
  0xeb   : > { %v363_v63 = vadd.f32 0.008332161, %v355_v55  ;;  %v419_v0 = vadd.f32 -0.0013887316, %v411_v56  ;;  %v367_v3 = vadd.f32 0.008332161, %v359_v59  ;;  %v705_v61 = vtrunc.f32 %v903_v46 }
  0xec   : > { %v423_v4 = vadd.f32 -0.0013887316, %v415_v60  ;;  %v927_v19 = vmul.f32 %v922_v10, %v922_v10  ;;  %v934_v23 = vadd.s32 1, %v918_v6  ;;  %v304_v26 = vmul.f32 0.0004837513, %v903_v46 }
  0xed   : > { %v371_v7 = vmul.f32 %v363_v63, %v907_v47  ;;  %v427_v8 = vmul.f32 %v419_v0, %v907_v47  ;;  %v375_v12 = vmul.f32 %v367_v3, %v351_v53  ;;  %vm939_vm3 = vcmp.eq.s32.totalorder %v479_v5, 1 }
  0xee   : > { %v431_v13 = vmul.f32 %v423_v4, %v351_v53  ;;  %v356_v29 = vmul.f32 -0.00019515296, %v927_v19  ;;  %v412_v30 = vmul.f32 2.4433157e-05, %v927_v19  ;;  %v476_v33 = vand.u32 1, %v918_v6 }
  0xef   : > { %v379_v16 = vadd.f32 -0.16666655, %v371_v7  ;;  %v435_v17 = vadd.f32 0.041666646, %v427_v8  ;;  %v383_v21 = vadd.f32 -0.16666655, %v375_v12  ;;  %v312_v34 = vsub.f32 %v296_v14, %v304_v26 }
  0xf0   : > { %v439_v22 = vadd.f32 0.041666646, %v431_v13  ;;  %vm946_vm4 = vcmp.eq.s32.totalorder %v507_v52, 2  ;;  %vm950_vm5 = vcmp.eq.s32.totalorder %v547_v11, 2  ;;  %v364_v39 = vadd.f32 0.008332161, %v356_v29 }
  0xf1   : > { %v387_v15 = vmul.f32 %v379_v16, %v907_v47  ;;  %v443_v27 = vmul.f32 %v435_v17, %v907_v47  ;;  %v391_v31 = vmul.f32 %v383_v21, %v351_v53  ;;  %v420_v40 = vadd.f32 -0.0013887316, %v412_v30 }
  0xf2   : > { %v447_v32 = vmul.f32 %v439_v22, %v351_v53  ;;  %vm955_vm6 = vcmp.eq.s32.totalorder %v511_v9, 2  ;;  %vm959_vm7 = vcmp.eq.s32.totalorder %v551_v18, 2  ;;  %v508_v51 = vand.u32 2, %v918_v6 }
  0xf3   : > { %v395_v35 = vadd.f32 1.0, %v387_v15  ;;  %v451_v36 = vadd.f32 -0.5, %v443_v27  ;;  %v399_v42 = vadd.f32 1.0, %v391_v31  ;;  %v320_v52 = vmul.f32 7.54979e-08, %v903_v46 }
  0xf4   : > { %v455_v44 = vadd.f32 -0.5, %v447_v32  ;;  %v372_v55 = vmul.f32 %v364_v39, %v927_v19  ;;  %v428_v56 = vmul.f32 %v420_v40, %v927_v19  ;;  %v548_v57 = vand.u32 2, %v934_v23 }
  0xf5   : > { %v459_v54 = vmul.f32 %v451_v36, %v907_v47  ;;  %v403_v58 = vmul.f32 %v395_v35, %v899_v41  ;;  %v970_v60 = vsub.f32 %v312_v34, %v320_v52  ;;  %v407_v63 = vmul.f32 %v399_v42, %v901_v43 }
  0xf6   : > { %v463_v59 = vmul.f32 %v455_v44, %v351_v53  ;;  %v380_v0 = vadd.f32 -0.16666655, %v372_v55  ;;  %v436_v47 = vadd.f32 0.041666646, %v428_v56  ;;  %v706_v2 = vcvt.f32.s32 %v705_v61 }
  0xf7   : > { %v467_v62 = vadd.f32 1.0, %v459_v54  ;;  %v978_v3 = vmul.f32 %v970_v60, %v970_v60  ;;  %v277_v41 = vfloor.f32 %v909_v49  ;;  %vm484_vm8 = vcmp.eq.s32.totalorder %v476_v33, 1 }
  0xf8   : > { %v471_v1 = vadd.f32 1.0, %v463_v59  ;;  %v388_v4 = vmul.f32 %v380_v0, %v927_v19  ;;  %v444_v43 = vmul.f32 %v436_v47, %v927_v19  ;;  %v344_v16 = vand.u32 3, %v706_v2  ;;  %v1038_v2 = vpop.f32.mrf.mxu0 }
  0xf9   : > { %v491_v53 = vsel %vm929_vm2, %v467_v62, %v403_v58  ;;  %v499_v46 = vsel %vm929_vm2, %v403_v58, %v467_v62  ;;  %v360_v17 = vmul.f32 -0.00019515296, %v978_v3  ;;  %vm1007_vm9 = vcmp.eq.s32.totalorder %v508_v51, 2 }
  0xfa   : > { %v523_v5 = vsub.f32 0.0, %v491_v53  ;;  %v563_v6 = vsub.f32 0.0, %v499_v46  ;;  %v495_v7 = vsel %vm939_vm3, %v471_v1, %v407_v63  ;;  %v503_v8 = vsel %vm939_vm3, %v407_v63, %v471_v1 }
  0xfb   : > { %v527_v9 = vsub.f32 0.0, %v495_v7  ;;  %v567_v49 = vsub.f32 0.0, %v503_v8  ;;  %v396_v11 = vadd.f32 1.0, %v388_v4  ;;  %v452_v12 = vadd.f32 -0.5, %v444_v43 }
  0xfc   : > { %v531_v13 = vsel %vm946_vm4, %v523_v5, %v491_v53  ;;  %v571_v14 = vsel %vm950_vm5, %v563_v6, %v499_v46  ;;  %v368_v23 = vadd.f32 0.008332161, %v360_v17  ;;  %v416_v26 = vmul.f32 2.4433157e-05, %v978_v3 }
  0xfd   : > { %579 = vst [vmem:[%s996_s30] sm:$0xff] %v531_v13  ;;  %587 = vst [vmem:[%s996_s30 + $0x10] sm:$0xff] %v571_v14  ;;  %v535_v18 = vsel %vm955_vm6, %v527_v9, %v495_v7  ;;  %v575_v20 = vsel %vm959_vm7, %v567_v49, %v503_v8  ;;  %v460_v21 = vmul.f32 %v452_v12, %v927_v19  ;;  %vm1013_vm10 = vcmp.eq.s32.totalorder %v548_v57, 2  ;;  %v1049_v7 = vpop.f32.mrf.mxu1 }
  0xfe   : > { %583 = vst [vmem:[%s996_s30 + $0x40] sm:$0xff] %v535_v18  ;;  %591 = vst [vmem:[%s996_s30 + $0x50] sm:$0xff] %v575_v20  ;;  %v404_v15 = vmul.f32 %v396_v11, %v922_v10  ;;  %v285_v29 = vmul.f32 1.5703125, %v277_v41  ;;  %v376_v19 = vmul.f32 %v368_v23, %v978_v3  ;;  %v424_v30 = vadd.f32 -0.0013887316, %v416_v26 }
  0xff   : > { %v468_v27 = vadd.f32 1.0, %v460_v21  ;;  %v544_v31 = vadd.s32 1, %v344_v16  ;;  %v281_v32 = vfloor.f32 %v911_v50  ;;  %v301_v36 = vmul.f32 0.0004837513, %v277_v41 }
 0x100   : > { %v293_v35 = vsub.f32 %v893_v24, %v285_v29  ;;  %v384_v38 = vadd.f32 -0.16666655, %v376_v19  ;;  %v432_v39 = vmul.f32 %v424_v30, %v978_v3  ;;  %v480_v40 = vand.u32 1, %v344_v16 }
 0x101   : > { %v492_v33 = vsel %vm484_vm8, %v468_v27, %v404_v15  ;;  %v500_v34 = vsel %vm484_vm8, %v404_v15, %v468_v27  ;;  %v317_v44 = vmul.f32 7.54979e-08, %v277_v41  ;;  %v699_v45 = vtrunc.f32 %v277_v41 }
 0x102   : > { %v524_v10 = vsub.f32 0.0, %v492_v33  ;;  %v564_v37 = vsub.f32 0.0, %v500_v34  ;;  %v309_v42 = vsub.f32 %v293_v35, %v301_v36  ;;  %v392_v51 = vmul.f32 %v384_v38, %v978_v3 }
 0x103   : > { %v440_v52 = vadd.f32 0.041666646, %v432_v39  ;;  %v512_v24 = vand.u32 2, %v344_v16  ;;  %v700_v55 = vcvt.f32.s32 %v699_v45  ;;  %v289_v56 = vmul.f32 1.5703125, %v281_v32 }
 0x104   : > { %v532_v48 = vsel %vm1007_vm9, %v524_v10, %v492_v33  ;;  %v572_v50 = vsel %vm1013_vm10, %v564_v37, %v500_v34  ;;  %v1028_v54 = vsub.f32 %v309_v42, %v317_v44  ;;  %v552_v58 = vand.u32 2, %v544_v31 }
 0x105   : > { %580 = vst [vmem:[%s996_s30 + $0x8] sm:$0xff] %v532_v48  ;;  %588 = vst [vmem:[%s996_s30 + $0x18] sm:$0xff] %v572_v50  ;;  %v448_v57 = vmul.f32 %v440_v52, %v978_v3  ;;  %vm1031_vm11 = vcmp.eq.s32.totalorder %v480_v40, 1  ;;  %v297_v62 = vsub.f32 %v895_v25, %v289_v56  ;;  %v400_v63 = vadd.f32 1.0, %v392_v51 }
 0x106   : > { %v349_v61 = vmul.f32 %v1028_v54, %v1028_v54  ;;  %v305_v47 = vmul.f32 0.0004837513, %v281_v32  ;;  %v707_v1 = vtrunc.f32 %v281_v32  ;;  %vm1040_vm12 = vcmp.eq.s32.totalorder %v512_v24, 2 }
 0x107   : > { %v456_v0 = vadd.f32 -0.5, %v448_v57  ;;  %v341_v53 = vand.u32 3, %v700_v55  ;;  %vm1045_vm13 = vcmp.eq.s32.totalorder %v552_v58, 2  ;;  %v321_v6 = vmul.f32 7.54979e-08, %v281_v32 }
 0x108   : > { %v357_v46 = vmul.f32 -0.00019515296, %v349_v61  ;;  %v413_v4 = vmul.f32 2.4433157e-05, %v349_v61  ;;  %v313_v25 = vsub.f32 %v297_v62, %v305_v47  ;;  %v262_v49 = vmul.f32 0.63661975, %v1038_v2 }
 0x109   : > { %v464_v43 = vmul.f32 %v456_v0, %v978_v3  ;;  %v408_v11 = vmul.f32 %v400_v63, %v970_v60  ;;  %v708_v14 = vcvt.f32.s32 %v707_v1  ;;  %v477_v17 = vand.u32 1, %v341_v53 }
 0x10a   : > { %v365_v8 = vadd.f32 0.008332161, %v357_v46  ;;  %v421_v9 = vadd.f32 -0.0013887316, %v413_v4  ;;  %v1053_v13 = vsub.f32 %v313_v25, %v321_v6  ;;  %v266_v18 = vmul.f32 0.63661975, %v1049_v7 }
 0x10b   : > { %v472_v12 = vadd.f32 1.0, %v464_v43  ;;  %v509_v22 = vand.u32 2, %v341_v53  ;;  %v541_v28 = vadd.s32 1, %v341_v53  ;;  %v345_v29 = vand.u32 3, %v708_v14 }
 0x10c   : > { %v373_v16 = vmul.f32 %v365_v8, %v349_v61  ;;  %v429_v3 = vmul.f32 %v421_v9, %v349_v61  ;;  %v353_v60 = vmul.f32 %v1053_v13, %v1053_v13  ;;  %v270_v10 = vadd.f32 0.5, %v262_v49 }
 0x10d   : > { %v496_v20 = vsel %vm1031_vm11, %v472_v12, %v408_v11  ;;  %v504_v21 = vsel %vm1031_vm11, %v408_v11, %v472_v12  ;;  %vm1068_vm14 = vcmp.eq.s32.totalorder %v477_v17, 1  ;;  %v274_v40 = vadd.f32 0.5, %v266_v18 }
 0x10e   : > { %v528_v23 = vsub.f32 0.0, %v496_v20  ;;  %v568_v26 = vsub.f32 0.0, %v504_v21  ;;  %v381_v15 = vadd.f32 -0.16666655, %v373_v16  ;;  %v437_v27 = vadd.f32 0.041666646, %v429_v3 }
 0x10f   : > { %v361_v19 = vmul.f32 -0.00019515296, %v353_v60  ;;  %v417_v30 = vmul.f32 2.4433157e-05, %v353_v60  ;;  %vm1072_vm15 = vcmp.eq.s32.totalorder %v509_v22, 2  ;;  %v278_v48 = vfloor.f32 %v270_v10 }
 0x110   : > { %v536_v31 = vsel %vm1040_vm12, %v528_v23, %v496_v20  ;;  %v576_v32 = vsel %vm1045_vm13, %v568_v26, %v504_v21  ;;  %v389_v33 = vmul.f32 %v381_v15, %v349_v61  ;;  %v445_v34 = vmul.f32 %v437_v27, %v349_v61 }
 0x111   : > { %584 = vst [vmem:[%s996_s30 + $0x48] sm:$0xff] %v536_v31  ;;  %592 = vst [vmem:[%s996_s30 + $0x58] sm:$0xff] %v576_v32  ;;  %v369_v35 = vadd.f32 0.008332161, %v361_v19  ;;  %v425_v36 = vadd.f32 -0.0013887316, %v417_v30  ;;  %v282_v24 = vfloor.f32 %v274_v40  ;;  %v701_v18 = vtrunc.f32 %v278_v48 }
 0x112   : > { %v397_v37 = vadd.f32 1.0, %v389_v33  ;;  %v453_v38 = vadd.f32 -0.5, %v445_v34  ;;  %v549_v51 = vand.u32 2, %v541_v28  ;;  %v481_v52 = vand.u32 1, %v345_v29 }
 0x113   : > { %v377_v44 = vmul.f32 %v369_v35, %v353_v60  ;;  %v433_v45 = vmul.f32 %v425_v36, %v353_v60  ;;  %v513_v57 = vand.u32 2, %v345_v29  ;;  %v286_v58 = vmul.f32 1.5703125, %v278_v48 }
 0x114   : > { %v461_v50 = vmul.f32 %v453_v38, %v349_v61  ;;  %v405_v59 = vmul.f32 %v397_v37, %v1028_v54  ;;  %v545_v63 = vadd.s32 1, %v345_v29  ;;  %v290_v0 = vmul.f32 1.5703125, %v282_v24 }
 0x115   : > { %v385_v55 = vadd.f32 -0.16666655, %v377_v44  ;;  %v441_v56 = vadd.f32 0.041666646, %v433_v45  ;;  %v294_v41 = vsub.f32 %v1038_v2, %v286_v58  ;;  %v302_v53 = vmul.f32 0.0004837513, %v278_v48 }
 0x116   : > { %v469_v62 = vadd.f32 1.0, %v461_v50  ;;  %v298_v4 = vsub.f32 %v1049_v7, %v290_v0  ;;  %v306_v43 = vmul.f32 0.0004837513, %v282_v24  ;;  %vm557_vm0 = vcmp.eq.s32.totalorder %v549_v51, 2 }
 0x117   : > { %v393_v47 = vmul.f32 %v385_v55, %v353_v60  ;;  %v449_v1 = vmul.f32 %v441_v56, %v353_v60  ;;  %v310_v8 = vsub.f32 %v294_v41, %v302_v53  ;;  %v318_v9 = vmul.f32 7.54979e-08, %v278_v48 }
 0x118   : > { %v493_v61 = vsel %vm1068_vm14, %v469_v62, %v405_v59  ;;  %v501_v46 = vsel %vm1068_vm14, %v405_v59, %v469_v62  ;;  %v314_v2 = vsub.f32 %v298_v4, %v306_v43  ;;  %v322_v14 = vmul.f32 7.54979e-08, %v282_v24 }
 0x119   : > { %v525_v54 = vsub.f32 0.0, %v493_v61  ;;  %v565_v5 = vsub.f32 0.0, %v501_v46  ;;  %v401_v25 = vadd.f32 1.0, %v393_v47  ;;  %v457_v6 = vadd.f32 -0.5, %v449_v1 }
 0x11a   : > { %v553_v16 = vand.u32 2, %v545_v63  ;;  %v326_v3 = vsub.f32 %v310_v8, %v318_v9  ;;  %v330_v20 = vsub.f32 %v314_v2, %v322_v14  ;;  %vm489_vm1 = vcmp.eq.s32.totalorder %v481_v52, 1 }
 0x11b   : > { %v533_v49 = vsel %vm1072_vm15, %v525_v54, %v493_v61  ;;  %v573_v11 = vsel %vm557_vm0, %v565_v5, %v501_v46  ;;  %v465_v12 = vmul.f32 %v457_v6, %v353_v60  ;;  %v409_v7 = vmul.f32 %v401_v25, %v1053_v13 }
 0x11c   : > { %581 = vst [vmem:[%s996_s30 + $0x20] sm:$0xff] %v533_v49  ;;  %589 = vst [vmem:[%s996_s30 + $0x30] sm:$0xff] %v573_v11  ;;  %vm521_vm2 = vcmp.eq.s32.totalorder %v513_v57, 2  ;;  %v350_v21 = vmul.f32 %v326_v3, %v326_v3  ;;  %v709_v26 = vtrunc.f32 %v282_v24  ;;  %v354_v15 = vmul.f32 %v330_v20, %v330_v20 }
 0x11d   : > { %v473_v17 = vadd.f32 1.0, %v465_v12  ;;  %vm561_vm3 = vcmp.eq.s32.totalorder %v553_v16, 2  ;;  %v702_v19 = vcvt.f32.s32 %v701_v18 }
 0x11e   : > { %v358_v28 = vmul.f32 -0.00019515296, %v350_v21  ;;  %v414_v29 = vmul.f32 2.4433157e-05, %v350_v21  ;;  %v362_v30 = vmul.f32 -0.00019515296, %v354_v15  ;;  %v710_v35 = vcvt.f32.s32 %v709_v26 }
 0x11f   : > { %v497_v22 = vsel %vm489_vm1, %v473_v17, %v409_v7  ;;  %v505_v23 = vsel %vm489_vm1, %v409_v7, %v473_v17  ;;  %v418_v13 = vmul.f32 2.4433157e-05, %v354_v15  ;;  %v342_v42 = vand.u32 3, %v702_v19 }
 0x120   : > { %v529_v60 = vsub.f32 0.0, %v497_v22  ;;  %v569_v27 = vsub.f32 0.0, %v505_v23  ;;  %v366_v33 = vadd.f32 0.008332161, %v358_v28  ;;  %v422_v34 = vadd.f32 -0.0013887316, %v414_v29 }
 0x121   : > { %v370_v36 = vadd.f32 0.008332161, %v362_v30  ;;  %v426_v10 = vadd.f32 -0.0013887316, %v418_v13  ;;  %v346_v48 = vand.u32 3, %v710_v35  ;;  %v478_v59 = vand.u32 1, %v342_v42 }
 0x122   : > { %v537_v31 = vsel %vm521_vm2, %v529_v60, %v497_v22  ;;  %v577_v32 = vsel %vm561_vm3, %v569_v27, %v505_v23  ;;  %v374_v37 = vmul.f32 %v366_v33, %v350_v21  ;;  %v430_v38 = vmul.f32 %v422_v34, %v350_v21 }
 0x123   : > { %585 = vst [vmem:[%s996_s30 + $0x60] sm:$0xff] %v537_v31  ;;  %593 = vst [vmem:[%s996_s30 + $0x70] sm:$0xff] %v577_v32  ;;  %v378_v39 = vmul.f32 %v370_v36, %v354_v15  ;;  %v434_v40 = vmul.f32 %v426_v10, %v354_v15  ;;  %v542_v62 = vadd.s32 1, %v342_v42  ;;  %v546_v47 = vadd.s32 1, %v346_v48 }
 0x124   : > { %v382_v44 = vadd.f32 -0.16666655, %v374_v37  ;;  %v438_v45 = vadd.f32 0.041666646, %v430_v38  ;;  %v482_v41 = vand.u32 1, %v346_v48  ;;  %v510_v53 = vand.u32 2, %v342_v42 }
 0x125   : > { %v386_v50 = vadd.f32 -0.16666655, %v378_v39  ;;  %v442_v51 = vadd.f32 0.041666646, %v434_v40  ;;  %vm486_vm4 = vcmp.eq.s32.totalorder %v478_v59, 1  ;;  %v550_v43 = vand.u32 2, %v542_v62 }
 0x126   : > { %v390_v52 = vmul.f32 %v382_v44, %v350_v21  ;;  %v446_v24 = vmul.f32 %v438_v45, %v350_v21  ;;  %v514_v25 = vand.u32 2, %v346_v48  ;;  %v554_v6 = vand.u32 2, %v546_v47 }
 0x127   : > { %v394_v55 = vmul.f32 %v386_v50, %v354_v15  ;;  %v450_v56 = vmul.f32 %v442_v51, %v354_v15  ;;  %vm490_vm5 = vcmp.eq.s32.totalorder %v482_v41, 1  ;;  %vm518_vm6 = vcmp.eq.s32.totalorder %v510_v53, 2 }
 0x128   : > { %v398_v57 = vadd.f32 1.0, %v390_v52  ;;  %v454_v58 = vadd.f32 -0.5, %v446_v24  ;;  %vm558_vm7 = vcmp.eq.s32.totalorder %v550_v43, 2  ;;  %vm522_vm8 = vcmp.eq.s32.totalorder %v514_v25, 2 }
 0x129   : > { %v402_v63 = vadd.f32 1.0, %v394_v55  ;;  %v458_v0 = vadd.f32 -0.5, %v450_v56  ;;  %vm562_vm9 = vcmp.eq.s32.totalorder %v554_v6, 2 }
 0x12a   : > { %v462_v1 = vmul.f32 %v454_v58, %v350_v21  ;;  %v406_v46 = vmul.f32 %v398_v57, %v326_v3 }
 0x12b   : > { %v466_v61 = vmul.f32 %v458_v0, %v354_v15  ;;  %v410_v54 = vmul.f32 %v402_v63, %v330_v20 }
 0x12c   : > { %v470_v4 = vadd.f32 1.0, %v462_v1 }
 0x12d   : > { %v474_v5 = vadd.f32 1.0, %v466_v61 }
 0x12e   : > { %v494_v8 = vsel %vm486_vm4, %v470_v4, %v406_v46  ;;  %v502_v9 = vsel %vm486_vm4, %v406_v46, %v470_v4 }
 0x12f   : > { %v526_v2 = vsub.f32 0.0, %v494_v8  ;;  %v566_v49 = vsub.f32 0.0, %v502_v9  ;;  %v498_v11 = vsel %vm490_vm5, %v474_v5, %v410_v54  ;;  %v506_v12 = vsel %vm490_vm5, %v410_v54, %v474_v5 }
 0x130   : > { %v530_v14 = vsub.f32 0.0, %v498_v11  ;;  %v570_v16 = vsub.f32 0.0, %v506_v12 }
 0x131   : > { %v534_v3 = vsel %vm518_vm6, %v526_v2, %v494_v8  ;;  %v574_v7 = vsel %vm558_vm7, %v566_v49, %v502_v9 }
 0x132   : > { %582 = vst [vmem:[%s996_s30 + $0x28] sm:$0xff] %v534_v3  ;;  %590 = vst [vmem:[%s996_s30 + $0x38] sm:$0xff] %v574_v7  ;;  %v538_v17 = vsel %vm522_vm8, %v530_v14, %v498_v11  ;;  %v578_v18 = vsel %vm562_vm9, %v570_v16, %v506_v12 }
 0x133   : > { %586 = vst [vmem:[%s996_s30 + $0x68] sm:$0xff] %v538_v17  ;;  %594 = vst [vmem:[%s996_s30 + $0x78] sm:$0xff] %v578_v18 }
 0x134   : > { %767 = shalt.err (!%p764_p3)
}
 0x135   : > { %s768_s21 = scalar_lea.hbm %s1095_s7, 2048  ;;  %s772_s24 = scalar_lea.hbm %s1147_s2, 4096 }
 0x136   : > { %p769_p4 = scmp.ne.s32.totalorder %s1095_s7, %s768_s21  ;;  %p773_p9 = scmp.lt.s32.totalorder %s1095_s7, %s1147_s2 }
 0x137   : > { %p774_p10 = scmp.lt.s32.totalorder %s772_s24, %s768_s21 }
 0x138   : > { %p770_p7 = pnand %p769_p4, %p873_p5 }
 0x139   : > { %p775_p11 = por %p774_p10, %p773_p9 }
 0x13a   : > { %p771_p8 = pneg %p770_p7 }
 0x13c   : > { %p776_p12 = pnand %p775_p11, %p771_p8 }
 0x13e   : > { %779 = shalt.err (!%p776_p12)
}
 0x13f   : > { %s818_s27 = smov 512   ;;  %s819_s28 = smov 32  }
 0x140   : > { %711 = dma.vmem_to_hbm [thread:$0]  (%p873_p5), %s1097_s4, 2048, %s1095_s7, %s1105_s8, %s818_s27, %s818_s27, %s819_s28  }
 0x141 PF: > { %p717_p13 = scmp.ge.s32.totalorder %s814_s12, 2  ;;  %s625_s29 = sand.u32 1, %s802_s9  }
 0x142   : > { %s626_s30 = scalar_lea.sflag [#allocation3], %s625_s29 }
 0x143   : > { %p714_p0 = pnand %p717_p13, %p877_p6 }
 0x145   : > { %p715_p1 = pneg %p714_p0 }
 0x147   : > { %797 = dma.done.wait (%p715_p1), %s626_s30, 2048  }
 0x148   : > { %799 = vsyncadd (%p715_p1), %s626_s30, 4294965248  ;;  %p12_p2 = scmp.ge.s32.totalorder %s860_s15, 4   ;;  %s1176_s9 = smov %s806_s10 }
 0x149   : > { %s1177_s10 = smov %s810_s11  ;;  %s1178_s11 = smov %s871_s18 }
 0x14a   : > { %s1179_s12 = smov %s860_s15  ;;  %14 = sbr.rel (!%p12_p2) target bundleno = 3 (0x3), region = 63 }
 0x14f   :  { %631 = vsyncpa [#allocation3], 1 }
 0x150   :  { %633 = vsyncpa [#allocation3 + $0x1], 1 }

</bundles_post_ra>
